<compile_context>
chip_gen: v7x
topology: tpu7x:2x2x1
jax: 0.10.0
libtpu: 0.0.40
codegen_flags: <defaults>
</compile_context>

<pallas_src>
import jax
import jax.numpy as jnp
from jax.experimental import pallas as pl
from jax.experimental.pallas import tpu as pltpu

DIMS = [28 * 28, 128, 64, 12, 3, 12, 64, 128, 28 * 28]
N_LAYERS = len(DIMS) - 1  # 8 linear layers
# Activation after each linear layer, exactly mirroring the PyTorch module
# (note: NO activation after the encoder's final Linear(12, 3)).
ACTS = ["relu", "relu", "relu", "none", "relu", "relu", "relu", "sigmoid"]


def _pad_to(n, m):
    return ((n + m - 1) // m) * m


# Per-layer padded K (rows) and N (cols) of the stored (in, out) weights.
# Input (784) and output (784) stay UNPADDED; hidden dims pad to the 128-lane width.
P_IN = [DIMS[0]] + [_pad_to(d, 128) for d in DIMS[1:N_LAYERS]]
P_OUT = [_pad_to(d, 128) for d in DIMS[1:N_LAYERS]] + [DIMS[-1]]


def autoencoder_kernel(x_ref, *refs):
    """refs = (w1..w8, b1..b8, out_ref). Weights bf16, biases f32, all VMEM-resident."""
    ws = refs[:N_LAYERS]
    bs = refs[N_LAYERS:2 * N_LAYERS]
    out_ref = refs[2 * N_LAYERS]

    h = x_ref[...].astype(jnp.bfloat16)                # (TB, 784) f32 read, bf16 cast on VPU
    for i in range(N_LAYERS):
        # bf16 MXU matmul with f32 accumulation; bias add + activation in f32.
        acc = jnp.dot(h, ws[i][...], preferred_element_type=jnp.float32) + bs[i][...]
        if ACTS[i] == "relu":
            acc = jnp.maximum(acc, 0.0)
        elif ACTS[i] == "sigmoid":
            # sigmoid(x) = 0.5*(tanh(x/2)+1): one EUP op (vs exp + reciprocal); kept in f32 for
            # v5e compatibility and tighter parity with torch.sigmoid.
            acc = 0.5 * (jnp.tanh(0.5 * acc) + 1.0)
        if i < N_LAYERS - 1:
            h = acc.astype(jnp.bfloat16)               # feed next MXU matmul in bf16
        else:
            out_ref[...] = acc.astype(out_ref.dtype)   # bf16, 784-wide (unpadded) store


def prepare_params(weights, biases):
    """One-time zero-padding + bf16 cast of parameters (hoisted off the per-call path).

    weights[i]: (DIMS[i], DIMS[i+1]) f32 (= PyTorch weight transposed); biases[i]: (DIMS[i+1],).
    Zero-padded rows/cols keep padded hidden lanes exactly 0 through the network.
    """
    w_p, b_p = [], []
    for i in range(N_LAYERS):
        wi = jnp.zeros((P_IN[i], P_OUT[i]), jnp.bfloat16)
        wi = wi.at[:DIMS[i], :DIMS[i + 1]].set(weights[i].astype(jnp.bfloat16))
        w_p.append(wi)
        bi = jnp.zeros((1, P_OUT[i]), jnp.float32)
        bi = bi.at[0, :DIMS[i + 1]].set(biases[i])
        b_p.append(bi)
    return tuple(w_p), tuple(b_p)


def _pick_tile(b):
    """Batch-tile size: big tiles amortize the ~0.35 us/grid-step overhead, but guarantee
    >=2 grid steps whenever possible so the parallel batch axis uses both v7x TensorCores."""
    if b <= 16:
        return b            # block == full batch dim: always layout-legal, no padding/OOB
    tb = 512                # 512x784 f32 in-tile + bf16 out-tile, double-buffered, << 32 MiB VMEM
    while tb > 16 and pl.cdiv(b, tb) < 2:
        tb //= 2
    return tb


@jax.jit
def autoencoder_forward(x, w_p, b_p):
    """x: (B, 784) f32 (unpadded); w_p/b_p from prepare_params. Returns (B, 784) bf16."""
    b = x.shape[0]
    tb = _pick_tile(b)
    grid = (pl.cdiv(b, tb),)   # trailing partial batch block (if any): OOB writes are dropped

    resident = lambda shape: pl.BlockSpec(shape, lambda i: (0, 0))  # fetched once, stays in VMEM
    in_specs = [pl.BlockSpec((tb, DIMS[0]), lambda i: (i, 0))]      # pipelined f32 batch tiles
    in_specs += [resident((P_IN[j], P_OUT[j])) for j in range(N_LAYERS)]
    in_specs += [resident((1, P_OUT[j])) for j in range(N_LAYERS)]

    return pl.pallas_call(
        autoencoder_kernel,
        out_shape=jax.ShapeDtypeStruct((b, DIMS[-1]), jnp.bfloat16),  # unpadded bf16 output
        grid=grid,
        in_specs=in_specs,
        out_specs=pl.BlockSpec((tb, DIMS[-1]), lambda i: (i, 0)),
        compiler_params=pltpu.CompilerParams(
            dimension_semantics=("parallel",)),   # megacore sharding of batch tiles on v7x
    )(x, *w_p, *b_p)


def init_params(key):
    """Deterministic synthetic init (PyTorch-Linear-like uniform scaling), W stored as (in, out)."""
    weights, biases = [], []
    for i in range(N_LAYERS):
        key, kw, kb = jax.random.split(key, 3)
        bound = 1.0 / jnp.sqrt(DIMS[i])
        weights.append(jax.random.uniform(
            kw, (DIMS[i], DIMS[i + 1]), jnp.float32, -bound, bound))
        biases.append(jax.random.uniform(
            kb, (DIMS[i + 1],), jnp.float32, -bound, bound))
    return weights, biases


def reference_forward(x, weights, biases):
    """Pure f32 JAX reference with the exact PyTorch activation schedule."""
    h = x
    for i in range(N_LAYERS):
        h = h @ weights[i] + biases[i]
        if ACTS[i] == "relu":
            h = jnp.maximum(h, 0.0)
        elif ACTS[i] == "sigmoid":
            h = jax.nn.sigmoid(h)
    return h


if __name__ == "__main__":
    key = jax.random.PRNGKey(0)
    key, kx = jax.random.split(key)
    batch = 4
    x = jax.random.normal(kx, (batch, 28 * 28), jnp.float32)

    weights, biases = init_params(key)
    w_p, b_p = prepare_params(weights, biases)     # one-time padding/cast, off the hot path

    out = autoencoder_forward(x, w_p, b_p)
    out = jax.block_until_ready(out)

    ref = reference_forward(x, weights, biases)
    assert out.shape == (batch, 28 * 28), out.shape
    assert out.dtype == jnp.bfloat16, out.dtype
    err = float(jnp.max(jnp.abs(out.astype(jnp.float32) - ref)))
    # bf16 weights/activations/output with f32 accumulation vs. pure f32 reference: ~2e-3 typical.
    assert err < 2e-2, err

    print("KERNEL_OK")
</pallas_src>

<mosaic_0001>
module attributes {stable_mosaic.version = 11 : i64} {
  func.func @autoencoder_kernel(%arg0: i32, %arg1: memref<4x784xf32, #tpu.memory_space<vmem>>, %arg2: memref<784x128xbf16, #tpu.memory_space<vmem>>, %arg3: memref<128x128xbf16, #tpu.memory_space<vmem>>, %arg4: memref<128x128xbf16, #tpu.memory_space<vmem>>, %arg5: memref<128x128xbf16, #tpu.memory_space<vmem>>, %arg6: memref<128x128xbf16, #tpu.memory_space<vmem>>, %arg7: memref<128x128xbf16, #tpu.memory_space<vmem>>, %arg8: memref<128x128xbf16, #tpu.memory_space<vmem>>, %arg9: memref<128x784xbf16, #tpu.memory_space<vmem>>, %arg10: memref<1x128xf32, #tpu.memory_space<vmem>>, %arg11: memref<1x128xf32, #tpu.memory_space<vmem>>, %arg12: memref<1x128xf32, #tpu.memory_space<vmem>>, %arg13: memref<1x128xf32, #tpu.memory_space<vmem>>, %arg14: memref<1x128xf32, #tpu.memory_space<vmem>>, %arg15: memref<1x128xf32, #tpu.memory_space<vmem>>, %arg16: memref<1x128xf32, #tpu.memory_space<vmem>>, %arg17: memref<1x784xf32, #tpu.memory_space<vmem>>, %arg18: memref<4x784xbf16, #tpu.memory_space<vmem>>) attributes {dimension_semantics = [#tpu.dimension_semantics<parallel>], iteration_bounds = array<i64: 1>, scalar_prefetch = 0 : i64, scratch_operands = 0 : i64, tpu.core_type = #tpu.core_type<tc>, window_params = [{transform_indices = @transform_0, window_bounds = array<i64: 4, 784>}, {pipeline_mode = #tpu.pipeline_mode<synchronous>, transform_indices = @transform_1, window_bounds = array<i64: 784, 128>}, {pipeline_mode = #tpu.pipeline_mode<synchronous>, transform_indices = @transform_2, window_bounds = array<i64: 128, 128>}, {pipeline_mode = #tpu.pipeline_mode<synchronous>, transform_indices = @transform_3, window_bounds = array<i64: 128, 128>}, {pipeline_mode = #tpu.pipeline_mode<synchronous>, transform_indices = @transform_4, window_bounds = array<i64: 128, 128>}, {pipeline_mode = #tpu.pipeline_mode<synchronous>, transform_indices = @transform_5, window_bounds = array<i64: 128, 128>}, {pipeline_mode = #tpu.pipeline_mode<synchronous>, transform_indices = @transform_6, window_bounds = array<i64: 128, 128>}, {pipeline_mode = #tpu.pipeline_mode<synchronous>, transform_indices = @transform_7, window_bounds = array<i64: 128, 128>}, {pipeline_mode = #tpu.pipeline_mode<synchronous>, transform_indices = @transform_8, window_bounds = array<i64: 128, 784>}, {pipeline_mode = #tpu.pipeline_mode<synchronous>, transform_indices = @transform_9, window_bounds = array<i64: 1, 128>}, {pipeline_mode = #tpu.pipeline_mode<synchronous>, transform_indices = @transform_10, window_bounds = array<i64: 1, 128>}, {pipeline_mode = #tpu.pipeline_mode<synchronous>, transform_indices = @transform_11, window_bounds = array<i64: 1, 128>}, {pipeline_mode = #tpu.pipeline_mode<synchronous>, transform_indices = @transform_12, window_bounds = array<i64: 1, 128>}, {pipeline_mode = #tpu.pipeline_mode<synchronous>, transform_indices = @transform_13, window_bounds = array<i64: 1, 128>}, {pipeline_mode = #tpu.pipeline_mode<synchronous>, transform_indices = @transform_14, window_bounds = array<i64: 1, 128>}, {pipeline_mode = #tpu.pipeline_mode<synchronous>, transform_indices = @transform_15, window_bounds = array<i64: 1, 128>}, {pipeline_mode = #tpu.pipeline_mode<synchronous>, transform_indices = @transform_16, window_bounds = array<i64: 1, 784>}, {transform_indices = @transform_17, window_bounds = array<i64: 4, 784>}]} {
    %c0 = arith.constant 0 : index
    %c0_0 = arith.constant 0 : index
    %0 = vector.load %arg1[%c0, %c0_0] : memref<4x784xf32, #tpu.memory_space<vmem>>, vector<4x784xf32>
    %1 = arith.truncf %0 : vector<4x784xf32> to vector<4x784xbf16>
    %c0_1 = arith.constant 0 : index
    %c0_2 = arith.constant 0 : index
    %2 = vector.load %arg2[%c0_1, %c0_2] : memref<784x128xbf16, #tpu.memory_space<vmem>>, vector<784x128xbf16>
    %cst = arith.constant dense<0.000000e+00> : vector<4x128xf32>
    %3 = tpu.matmul %1, %2, %cst {dimension_numbers = #tpu.dot_dimension_numbers<[1], [0], [0], [1], [0, 0, 1, 1], [], []>} : vector<4x784xbf16>, vector<784x128xbf16>, vector<4x128xf32> -> vector<4x128xf32>
    %c0_3 = arith.constant 0 : index
    %c0_4 = arith.constant 0 : index
    %4 = vector.load %arg10[%c0_3, %c0_4] : memref<1x128xf32, #tpu.memory_space<vmem>>, vector<1x128xf32>
    %5 = vector.broadcast %4 : vector<1x128xf32> to vector<4x128xf32>
    %6 = arith.addf %3, %5 : vector<4x128xf32>
    %cst_5 = arith.constant 0.000000e+00 : f32
    %7 = vector.broadcast %cst_5 : f32 to vector<4x128xf32>
    %8 = arith.maximumf %6, %7 : vector<4x128xf32>
    %9 = arith.truncf %8 : vector<4x128xf32> to vector<4x128xbf16>
    %c0_6 = arith.constant 0 : index
    %c0_7 = arith.constant 0 : index
    %10 = vector.load %arg3[%c0_6, %c0_7] : memref<128x128xbf16, #tpu.memory_space<vmem>>, vector<128x128xbf16>
    %cst_8 = arith.constant dense<0.000000e+00> : vector<4x128xf32>
    %11 = tpu.matmul %9, %10, %cst_8 {dimension_numbers = #tpu.dot_dimension_numbers<[1], [0], [0], [1], [0, 0, 1, 1], [], []>} : vector<4x128xbf16>, vector<128x128xbf16>, vector<4x128xf32> -> vector<4x128xf32>
    %c0_9 = arith.constant 0 : index
    %c0_10 = arith.constant 0 : index
    %12 = vector.load %arg11[%c0_9, %c0_10] : memref<1x128xf32, #tpu.memory_space<vmem>>, vector<1x128xf32>
    %13 = vector.broadcast %12 : vector<1x128xf32> to vector<4x128xf32>
    %14 = arith.addf %11, %13 : vector<4x128xf32>
    %cst_11 = arith.constant 0.000000e+00 : f32
    %15 = vector.broadcast %cst_11 : f32 to vector<4x128xf32>
    %16 = arith.maximumf %14, %15 : vector<4x128xf32>
    %17 = arith.truncf %16 : vector<4x128xf32> to vector<4x128xbf16>
    %c0_12 = arith.constant 0 : index
    %c0_13 = arith.constant 0 : index
    %18 = vector.load %arg4[%c0_12, %c0_13] : memref<128x128xbf16, #tpu.memory_space<vmem>>, vector<128x128xbf16>
    %cst_14 = arith.constant dense<0.000000e+00> : vector<4x128xf32>
    %19 = tpu.matmul %17, %18, %cst_14 {dimension_numbers = #tpu.dot_dimension_numbers<[1], [0], [0], [1], [0, 0, 1, 1], [], []>} : vector<4x128xbf16>, vector<128x128xbf16>, vector<4x128xf32> -> vector<4x128xf32>
    %c0_15 = arith.constant 0 : index
    %c0_16 = arith.constant 0 : index
    %20 = vector.load %arg12[%c0_15, %c0_16] : memref<1x128xf32, #tpu.memory_space<vmem>>, vector<1x128xf32>
    %21 = vector.broadcast %20 : vector<1x128xf32> to vector<4x128xf32>
    %22 = arith.addf %19, %21 : vector<4x128xf32>
    %cst_17 = arith.constant 0.000000e+00 : f32
    %23 = vector.broadcast %cst_17 : f32 to vector<4x128xf32>
    %24 = arith.maximumf %22, %23 : vector<4x128xf32>
    %25 = arith.truncf %24 : vector<4x128xf32> to vector<4x128xbf16>
    %c0_18 = arith.constant 0 : index
    %c0_19 = arith.constant 0 : index
    %26 = vector.load %arg5[%c0_18, %c0_19] : memref<128x128xbf16, #tpu.memory_space<vmem>>, vector<128x128xbf16>
    %cst_20 = arith.constant dense<0.000000e+00> : vector<4x128xf32>
    %27 = tpu.matmul %25, %26, %cst_20 {dimension_numbers = #tpu.dot_dimension_numbers<[1], [0], [0], [1], [0, 0, 1, 1], [], []>} : vector<4x128xbf16>, vector<128x128xbf16>, vector<4x128xf32> -> vector<4x128xf32>
    %c0_21 = arith.constant 0 : index
    %c0_22 = arith.constant 0 : index
    %28 = vector.load %arg13[%c0_21, %c0_22] : memref<1x128xf32, #tpu.memory_space<vmem>>, vector<1x128xf32>
    %29 = vector.broadcast %28 : vector<1x128xf32> to vector<4x128xf32>
    %30 = arith.addf %27, %29 : vector<4x128xf32>
    %31 = arith.truncf %30 : vector<4x128xf32> to vector<4x128xbf16>
    %c0_23 = arith.constant 0 : index
    %c0_24 = arith.constant 0 : index
    %32 = vector.load %arg6[%c0_23, %c0_24] : memref<128x128xbf16, #tpu.memory_space<vmem>>, vector<128x128xbf16>
    %cst_25 = arith.constant dense<0.000000e+00> : vector<4x128xf32>
    %33 = tpu.matmul %31, %32, %cst_25 {dimension_numbers = #tpu.dot_dimension_numbers<[1], [0], [0], [1], [0, 0, 1, 1], [], []>} : vector<4x128xbf16>, vector<128x128xbf16>, vector<4x128xf32> -> vector<4x128xf32>
    %c0_26 = arith.constant 0 : index
    %c0_27 = arith.constant 0 : index
    %34 = vector.load %arg14[%c0_26, %c0_27] : memref<1x128xf32, #tpu.memory_space<vmem>>, vector<1x128xf32>
    %35 = vector.broadcast %34 : vector<1x128xf32> to vector<4x128xf32>
    %36 = arith.addf %33, %35 : vector<4x128xf32>
    %cst_28 = arith.constant 0.000000e+00 : f32
    %37 = vector.broadcast %cst_28 : f32 to vector<4x128xf32>
    %38 = arith.maximumf %36, %37 : vector<4x128xf32>
    %39 = arith.truncf %38 : vector<4x128xf32> to vector<4x128xbf16>
    %c0_29 = arith.constant 0 : index
    %c0_30 = arith.constant 0 : index
    %40 = vector.load %arg7[%c0_29, %c0_30] : memref<128x128xbf16, #tpu.memory_space<vmem>>, vector<128x128xbf16>
    %cst_31 = arith.constant dense<0.000000e+00> : vector<4x128xf32>
    %41 = tpu.matmul %39, %40, %cst_31 {dimension_numbers = #tpu.dot_dimension_numbers<[1], [0], [0], [1], [0, 0, 1, 1], [], []>} : vector<4x128xbf16>, vector<128x128xbf16>, vector<4x128xf32> -> vector<4x128xf32>
    %c0_32 = arith.constant 0 : index
    %c0_33 = arith.constant 0 : index
    %42 = vector.load %arg15[%c0_32, %c0_33] : memref<1x128xf32, #tpu.memory_space<vmem>>, vector<1x128xf32>
    %43 = vector.broadcast %42 : vector<1x128xf32> to vector<4x128xf32>
    %44 = arith.addf %41, %43 : vector<4x128xf32>
    %cst_34 = arith.constant 0.000000e+00 : f32
    %45 = vector.broadcast %cst_34 : f32 to vector<4x128xf32>
    %46 = arith.maximumf %44, %45 : vector<4x128xf32>
    %47 = arith.truncf %46 : vector<4x128xf32> to vector<4x128xbf16>
    %c0_35 = arith.constant 0 : index
    %c0_36 = arith.constant 0 : index
    %48 = vector.load %arg8[%c0_35, %c0_36] : memref<128x128xbf16, #tpu.memory_space<vmem>>, vector<128x128xbf16>
    %cst_37 = arith.constant dense<0.000000e+00> : vector<4x128xf32>
    %49 = tpu.matmul %47, %48, %cst_37 {dimension_numbers = #tpu.dot_dimension_numbers<[1], [0], [0], [1], [0, 0, 1, 1], [], []>} : vector<4x128xbf16>, vector<128x128xbf16>, vector<4x128xf32> -> vector<4x128xf32>
    %c0_38 = arith.constant 0 : index
    %c0_39 = arith.constant 0 : index
    %50 = vector.load %arg16[%c0_38, %c0_39] : memref<1x128xf32, #tpu.memory_space<vmem>>, vector<1x128xf32>
    %51 = vector.broadcast %50 : vector<1x128xf32> to vector<4x128xf32>
    %52 = arith.addf %49, %51 : vector<4x128xf32>
    %cst_40 = arith.constant 0.000000e+00 : f32
    %53 = vector.broadcast %cst_40 : f32 to vector<4x128xf32>
    %54 = arith.maximumf %52, %53 : vector<4x128xf32>
    %55 = arith.truncf %54 : vector<4x128xf32> to vector<4x128xbf16>
    %c0_41 = arith.constant 0 : index
    %c0_42 = arith.constant 0 : index
    %56 = vector.load %arg9[%c0_41, %c0_42] : memref<128x784xbf16, #tpu.memory_space<vmem>>, vector<128x784xbf16>
    %cst_43 = arith.constant dense<0.000000e+00> : vector<4x784xf32>
    %57 = tpu.matmul %55, %56, %cst_43 {dimension_numbers = #tpu.dot_dimension_numbers<[1], [0], [0], [1], [0, 0, 1, 1], [], []>} : vector<4x128xbf16>, vector<128x784xbf16>, vector<4x784xf32> -> vector<4x784xf32>
    %c0_44 = arith.constant 0 : index
    %c0_45 = arith.constant 0 : index
    %58 = vector.load %arg17[%c0_44, %c0_45] : memref<1x784xf32, #tpu.memory_space<vmem>>, vector<1x784xf32>
    %59 = vector.broadcast %58 : vector<1x784xf32> to vector<4x784xf32>
    %60 = arith.addf %57, %59 : vector<4x784xf32>
    %cst_46 = arith.constant 5.000000e-01 : f32
    %61 = vector.broadcast %cst_46 : f32 to vector<4x784xf32>
    %62 = arith.mulf %61, %60 : vector<4x784xf32>
    %63 = math.tanh %62 : vector<4x784xf32>
    %cst_47 = arith.constant 1.000000e+00 : f32
    %64 = vector.broadcast %cst_47 : f32 to vector<4x784xf32>
    %65 = arith.addf %63, %64 : vector<4x784xf32>
    %cst_48 = arith.constant 5.000000e-01 : f32
    %66 = vector.broadcast %cst_48 : f32 to vector<4x784xf32>
    %67 = arith.mulf %66, %65 : vector<4x784xf32>
    %68 = arith.truncf %67 : vector<4x784xf32> to vector<4x784xbf16>
    %c0_49 = arith.constant 0 : index
    %c0_50 = arith.constant 0 : index
    %69 = vector.load %arg18[%c0_49, %c0_50] : memref<4x784xbf16, #tpu.memory_space<vmem>>, vector<4x784xbf16>
    tpu.vector_store %arg18[%c0_49, %c0_50], %68 {strides = array<i32>} : memref<4x784xbf16, #tpu.memory_space<vmem>>, vector<4x784xbf16>,
    return
  }
  func.func @transform_0(%arg0: i32) -> (i32, i32) {
    %c0_i32 = arith.constant 0 : i32
    %c0_i32_0 = arith.constant 0 : i32
    return %arg0, %c0_i32 : i32, i32
  }
  func.func @transform_1(%arg0: i32) -> (i32, i32) {
    %c0_i32 = arith.constant 0 : i32
    %c0_i32_0 = arith.constant 0 : i32
    %c0_i32_1 = arith.constant 0 : i32
    return %c0_i32, %c0_i32_0 : i32, i32
  }
  func.func @transform_2(%arg0: i32) -> (i32, i32) {
    %c0_i32 = arith.constant 0 : i32
    %c0_i32_0 = arith.constant 0 : i32
    %c0_i32_1 = arith.constant 0 : i32
    return %c0_i32, %c0_i32_0 : i32, i32
  }
  func.func @transform_3(%arg0: i32) -> (i32, i32) {
    %c0_i32 = arith.constant 0 : i32
    %c0_i32_0 = arith.constant 0 : i32
    %c0_i32_1 = arith.constant 0 : i32
    return %c0_i32, %c0_i32_0 : i32, i32
  }
  func.func @transform_4(%arg0: i32) -> (i32, i32) {
    %c0_i32 = arith.constant 0 : i32
    %c0_i32_0 = arith.constant 0 : i32
    %c0_i32_1 = arith.constant 0 : i32
    return %c0_i32, %c0_i32_0 : i32, i32
  }
  func.func @transform_5(%arg0: i32) -> (i32, i32) {
    %c0_i32 = arith.constant 0 : i32
    %c0_i32_0 = arith.constant 0 : i32
    %c0_i32_1 = arith.constant 0 : i32
    return %c0_i32, %c0_i32_0 : i32, i32
  }
  func.func @transform_6(%arg0: i32) -> (i32, i32) {
    %c0_i32 = arith.constant 0 : i32
    %c0_i32_0 = arith.constant 0 : i32
    %c0_i32_1 = arith.constant 0 : i32
    return %c0_i32, %c0_i32_0 : i32, i32
  }
  func.func @transform_7(%arg0: i32) -> (i32, i32) {
    %c0_i32 = arith.constant 0 : i32
    %c0_i32_0 = arith.constant 0 : i32
    %c0_i32_1 = arith.constant 0 : i32
    return %c0_i32, %c0_i32_0 : i32, i32
  }
  func.func @transform_8(%arg0: i32) -> (i32, i32) {
    %c0_i32 = arith.constant 0 : i32
    %c0_i32_0 = arith.constant 0 : i32
    %c0_i32_1 = arith.constant 0 : i32
    return %c0_i32, %c0_i32_0 : i32, i32
  }
  func.func @transform_9(%arg0: i32) -> (i32, i32) {
    %c0_i32 = arith.constant 0 : i32
    %c0_i32_0 = arith.constant 0 : i32
    %c0_i32_1 = arith.constant 0 : i32
    return %c0_i32, %c0_i32_0 : i32, i32
  }
  func.func @transform_10(%arg0: i32) -> (i32, i32) {
    %c0_i32 = arith.constant 0 : i32
    %c0_i32_0 = arith.constant 0 : i32
    %c0_i32_1 = arith.constant 0 : i32
    return %c0_i32, %c0_i32_0 : i32, i32
  }
  func.func @transform_11(%arg0: i32) -> (i32, i32) {
    %c0_i32 = arith.constant 0 : i32
    %c0_i32_0 = arith.constant 0 : i32
    %c0_i32_1 = arith.constant 0 : i32
    return %c0_i32, %c0_i32_0 : i32, i32
  }
  func.func @transform_12(%arg0: i32) -> (i32, i32) {
    %c0_i32 = arith.constant 0 : i32
    %c0_i32_0 = arith.constant 0 : i32
    %c0_i32_1 = arith.constant 0 : i32
    return %c0_i32, %c0_i32_0 : i32, i32
  }
  func.func @transform_13(%arg0: i32) -> (i32, i32) {
    %c0_i32 = arith.constant 0 : i32
    %c0_i32_0 = arith.constant 0 : i32
    %c0_i32_1 = arith.constant 0 : i32
    return %c0_i32, %c0_i32_0 : i32, i32
  }
  func.func @transform_14(%arg0: i32) -> (i32, i32) {
    %c0_i32 = arith.constant 0 : i32
    %c0_i32_0 = arith.constant 0 : i32
    %c0_i32_1 = arith.constant 0 : i32
    return %c0_i32, %c0_i32_0 : i32, i32
  }
  func.func @transform_15(%arg0: i32) -> (i32, i32) {
    %c0_i32 = arith.constant 0 : i32
    %c0_i32_0 = arith.constant 0 : i32
    %c0_i32_1 = arith.constant 0 : i32
    return %c0_i32, %c0_i32_0 : i32, i32
  }
  func.func @transform_16(%arg0: i32) -> (i32, i32) {
    %c0_i32 = arith.constant 0 : i32
    %c0_i32_0 = arith.constant 0 : i32
    %c0_i32_1 = arith.constant 0 : i32
    return %c0_i32, %c0_i32_0 : i32, i32
  }
  func.func @transform_17(%arg0: i32) -> (i32, i32) {
    %c0_i32 = arith.constant 0 : i32
    %c0_i32_0 = arith.constant 0 : i32
    return %arg0, %c0_i32 : i32, i32
  }
}

</mosaic_0001>

<bundles_post_ra>
// kernel: autoencoder_forward.1
= control target key start
LH: loop header
LB: loop body
LE: loop exit
PB: predicated region body
PF: predicated region fallthrough
CT: control target
= control target key end

     0   :  { %s3309_s0 = inlined_call_operand.vmem [shape: f32[4,784], index: 0, kind: input, shape index: {}]   ;;  %s3310_s1 = inlined_call_operand.vmem [shape: bf16[784,128], index: 1, kind: input, shape index: {}]   ;;  %s3311_s2 = inlined_call_operand.vmem [shape: bf16[128,128], index: 2, kind: input, shape index: {}]   ;;  %s3312_s3 = inlined_call_operand.vmem [shape: bf16[128,128], index: 3, kind: input, shape index: {}]   ;;  %s3313_s4 = inlined_call_operand.vmem [shape: bf16[128,128], index: 4, kind: input, shape index: {}]   ;;  %s3314_s5 = inlined_call_operand.vmem [shape: bf16[128,128], index: 5, kind: input, shape index: {}]   ;;  %s3315_s6 = inlined_call_operand.vmem [shape: bf16[128,128], index: 6, kind: input, shape index: {}]   ;;  %s3316_s7 = inlined_call_operand.vmem [shape: bf16[128,128], index: 7, kind: input, shape index: {}]   ;;  %s3317_s8 = inlined_call_operand.vmem [shape: bf16[128,784], index: 8, kind: input, shape index: {}]   ;;  %s3318_s9 = inlined_call_operand.vmem [shape: f32[1,128], index: 9, kind: input, shape index: {}]   ;;  %s3319_s10 = inlined_call_operand.vmem [shape: f32[1,128], index: 10, kind: input, shape index: {}]   ;;  %s3320_s11 = inlined_call_operand.vmem [shape: f32[1,128], index: 11, kind: input, shape index: {}]   ;;  %s3321_s12 = inlined_call_operand.vmem [shape: f32[1,128], index: 12, kind: input, shape index: {}]   ;;  %s3322_s13 = inlined_call_operand.vmem [shape: f32[1,128], index: 13, kind: input, shape index: {}]   ;;  %s3323_s14 = inlined_call_operand.vmem [shape: f32[1,128], index: 14, kind: input, shape index: {}]   ;;  %s3324_s15 = inlined_call_operand.vmem [shape: f32[1,128], index: 15, kind: input, shape index: {}]   ;;  %s3325_s16 = inlined_call_operand.vmem [shape: f32[1,784], index: 16, kind: input, shape index: {}]   ;;  %s3326_s17 = inlined_call_operand.hbm [shape: bf16[4,784], index: 17, kind: output, shape index: {}]  }
   0x1   :  { %3329 = sst [smem:[#allocation5_spill]] %s3309_s0 }
   0x2   :  { %3330 = sst [smem:[#allocation6_spill]] %s3310_s1 }
   0x3   :  { %s3331_s26 = sld [smem:[#allocation6_spill]]  ;;  %s3332_s19 = sld [smem:[#allocation5_spill]]  ;;  %v2634_v42 = vmov 0.0   ;;  %vm2635_vm0 = vmmov 0   ;;  %vm477_vm1 = vcmask 130048  }
   0x9   :  { %v2416_v0 = vld [vmem:[%s3331_s26 + $0x40] sm:$0xff]   ;;  %v2420_v4 = vld [vmem:[%s3331_s26 + $0x48] sm:$0xff]   ;;  %v2424_v8 = vld [vmem:[%s3331_s26 + $0x50] sm:$0xff]  }
   0xa   :  { %v2417_v1 = vld [vmem:[%s3331_s26] sm:$0xff]   ;;  %2134 = vmatprep.subr.bf16.mxu0 %v2416_v0  ;;  %v2421_v5 = vld [vmem:[%s3331_s26 + $0x8] sm:$0xff]   ;;  %v2425_v9 = vld [vmem:[%s3331_s26 + $0x10] sm:$0xff]  }
   0xb   :  { %v2418_v2 = vld [vmem:[%s3331_s26 + $0xc0] sm:$0xff]   ;;  %2135 = vmatpush3.bf16.msra.mxu0 %v2417_v1  ;;  %v2422_v6 = vld [vmem:[%s3331_s26 + $0xc8] sm:$0xff]   ;;  %v2426_v10 = vld [vmem:[%s3331_s26 + $0xd0] sm:$0xff]  }
   0xc   :  { %v2419_v3 = vld [vmem:[%s3331_s26 + $0x80] sm:$0xff]   ;;  %2156 = vmatprep.subr.bf16.mxu1 %v2418_v2  ;;  %2136 = vmatprep.subr.bf16.mxu0 %v2420_v4  ;;  %v2423_v7 = vld [vmem:[%s3331_s26 + $0x88] sm:$0xff]   ;;  %v2427_v11 = vld [vmem:[%s3331_s26 + $0x90] sm:$0xff]  }
   0xd   :  { %2157 = vmatpush3.bf16.msra.mxu1 %v2419_v3  ;;  %v2428_v12 = vld [vmem:[%s3331_s26 + $0x58] sm:$0xff]   ;;  %v2432_v16 = vld [vmem:[%s3331_s26 + $0x60] sm:$0xff]   ;;  %v2436_v20 = vld [vmem:[%s3331_s26 + $0x68] sm:$0xff]  }
   0xe   :  { %2158 = vmatprep.subr.bf16.mxu1 %v2422_v6  ;;  %v2429_v13 = vld [vmem:[%s3331_s26 + $0x18] sm:$0xff]   ;;  %v2433_v17 = vld [vmem:[%s3331_s26 + $0x20] sm:$0xff]   ;;  %v2437_v21 = vld [vmem:[%s3331_s26 + $0x28] sm:$0xff]  }
   0xf   :  { %2137 = vmatpush3.bf16.msra.mxu0 %v2421_v5  ;;  %v2430_v14 = vld [vmem:[%s3331_s26 + $0xd8] sm:$0xff]   ;;  %v2434_v18 = vld [vmem:[%s3331_s26 + $0xe0] sm:$0xff]   ;;  %v2438_v22 = vld [vmem:[%s3331_s26 + $0xe8] sm:$0xff]  }
  0x10   :  { %2138 = vmatprep.subr.bf16.mxu0 %v2424_v8  ;;  %v2431_v15 = vld [vmem:[%s3331_s26 + $0x98] sm:$0xff]   ;;  %v2435_v19 = vld [vmem:[%s3331_s26 + $0xa0] sm:$0xff]   ;;  %v2439_v23 = vld [vmem:[%s3331_s26 + $0xa8] sm:$0xff]  }
  0x11   :  { %2159 = vmatpush3.bf16.msra.mxu1 %v2423_v7  ;;  %v2440_v24 = vld [vmem:[%s3331_s26 + $0x70] sm:$0xff]   ;;  %v2444_v28 = vld [vmem:[%s3331_s26 + $0x78] sm:$0xff]   ;;  %v58_v31 = vld [vmem:[%s3332_s19] sm:$0xff] }
  0x12   :  { %2160 = vmatprep.subr.bf16.mxu1 %v2426_v10  ;;  %v2441_v25 = vld [vmem:[%s3331_s26 + $0x30] sm:$0xff]   ;;  %v2445_v29 = vld [vmem:[%s3331_s26 + $0x38] sm:$0xff]   ;;  %v65_v32 = vcombine.high %v58_v31, %v58_v31  ;;  %v71_v34 = vpack.c.bf16 %v58_v31, %v58_v31  ;;  %v2449_v35 = vld [vmem:[%s3331_s26 + $0x140] sm:$0xff]  }
  0x13   :  { %2139 = vmatpush3.bf16.msra.mxu0 %v2425_v9  ;;  %v2442_v26 = vld [vmem:[%s3331_s26 + $0xf0] sm:$0xff]   ;;  %v2446_v30 = vld [vmem:[%s3331_s26 + $0xf8] sm:$0xff]   ;;  %v59_v36 = vld [vmem:[%s3332_s19 + $0x8] sm:$0xff] }
  0x14   :  { %2140 = vmatprep.subr.bf16.mxu0 %v2428_v12  ;;  %v2443_v27 = vld [vmem:[%s3331_s26 + $0xb0] sm:$0xff]   ;;  %v2448_v33 = vld [vmem:[%s3331_s26 + $0xb8] sm:$0xff]   ;;  %v72_v37 = vpack.c.bf16 %v65_v32, %v65_v32  ;;  %v66_v38 = vcombine.high %v59_v36, %v59_v36  ;;  %v2451_v39 = vld [vmem:[%s3331_s26 + $0x100] sm:$0xff]   ;;  %v73_v40 = vpack.c.bf16 %v59_v36, %v59_v36 }
  0x15   :  { %2161 = vmatpush3.bf16.msra.mxu1 %v2427_v11  ;;  %v2452_v41 = vld [vmem:[%s3331_s26 + $0x148] sm:$0xff]   ;;  %v2454_v45 = vld [vmem:[%s3331_s26 + $0x150] sm:$0xff]   ;;  %v2456_v47 = vld [vmem:[%s3331_s26 + $0x158] sm:$0xff]  }
  0x16   :  { %2162 = vmatprep.subr.bf16.mxu1 %v2430_v14  ;;  %513 = vmatprep.mubr.bf16.mxu0 %v72_v37  ;;  %v74_v43 = vpack.c.bf16 %v66_v38, %v66_v38  ;;  %v2453_v44 = vld [vmem:[%s3331_s26 + $0x108] sm:$0xff]   ;;  %v2455_v46 = vld [vmem:[%s3331_s26 + $0x110] sm:$0xff]   ;;  %v2457_v48 = vld [vmem:[%s3331_s26 + $0x118] sm:$0xff]  }
  0x17   :  { %2141 = vmatpush3.bf16.msra.mxu0 %v2429_v13  ;;  %v2458_v49 = vld [vmem:[%s3331_s26 + $0x160] sm:$0xff]   ;;  %v2460_v51 = vld [vmem:[%s3331_s26 + $0x168] sm:$0xff]   ;;  %v60_v53 = vld [vmem:[%s3332_s19 + $0x10] sm:$0xff] }
  0x18   :  { %2142 = vmatprep.subr.bf16.mxu0 %v2432_v16  ;;  %553 = vmatprep.mubr.bf16.mxu1 %v74_v43  ;;  %v2459_v50 = vld [vmem:[%s3331_s26 + $0x120] sm:$0xff]   ;;  %v67_v54 = vcombine.high %v60_v53, %v60_v53  ;;  %v61_v55 = vld [vmem:[%s3332_s19 + $0x18] sm:$0xf]  ;;  %v2461_v57 = vld [vmem:[%s3331_s26 + $0x128] sm:$0xff]   ;;  %v75_v63 = vpack.c.bf16 %v60_v53, %v60_v53 }
  0x19   :  { %2163 = vmatpush3.bf16.msra.mxu1 %v2431_v15  ;;  %v2466_v52 = vld [vmem:[%s3331_s26 + $0x180] sm:$0xff]   ;;  %v77_v56 = vpack.c.bf16 %v61_v55, %v61_v55  ;;  %v2462_v59 = vld [vmem:[%s3331_s26 + $0x170] sm:$0xff]   ;;  %v2464_v61 = vld [vmem:[%s3331_s26 + $0x178] sm:$0xff]  }
  0x1a   :  { %2164 = vmatprep.subr.bf16.mxu1 %v2434_v18  ;;  %v76_v58 = vpack.c.bf16 %v67_v54, %v67_v54  ;;  %v2463_v60 = vld [vmem:[%s3331_s26 + $0x130] sm:$0xff]   ;;  %v2465_v62 = vld [vmem:[%s3331_s26 + $0x138] sm:$0xff]  }
  0x1b   :  { %2143 = vmatpush3.bf16.msra.mxu0 %v2433_v17 }
  0x1c   :  { %2144 = vmatprep.subr.bf16.mxu0 %v2436_v20 }
  0x1d   :  { %2165 = vmatpush3.bf16.msra.mxu1 %v2435_v19 }
  0x1e   :  { %2166 = vmatprep.subr.bf16.mxu1 %v2438_v22 }
  0x1f   :  { %2145 = vmatpush3.bf16.msra.mxu0 %v2437_v21 }
  0x20   :  { %2146 = vmatprep.subr.bf16.mxu0 %v2440_v24 }
  0x21   :  { %2167 = vmatpush3.bf16.msra.mxu1 %v2439_v23 }
  0x22   :  { %2168 = vmatprep.subr.bf16.mxu1 %v2442_v26 }
  0x23   :  { %2147 = vmatpush3.bf16.msra.mxu0 %v2441_v25 }
  0x24   :  { %2148 = vmatprep.subr.bf16.mxu0 %v2444_v28 }
  0x25   :  { %2169 = vmatpush3.bf16.msra.mxu1 %v2443_v27 }
  0x26   :  { %2170 = vmatprep.subr.bf16.mxu1 %v2446_v30 }
  0x27   :  { %2149 = vmatpush3.bf16.msra.mxu0 %v2445_v29 }
  0x28   :  { %2178 = vmatprep.subr.bf16.mxu0 %v2449_v35 }
  0x29   :  { %2171 = vmatpush3.bf16.msra.mxu1 %v2448_v33 }
  0x2a   :  { %2265 = vmatprep.subr.bf16.mxu1 %v2634_v42  ;;  %514 = vmatmul.mubr.bf16.vlgmr.msra.gmra.mrb[0].mxu0 %v71_v34 }
  0x2b   :  { %2179 = vmatpush3.bf16.msra.mxu0 %v2451_v39  ;;  %593 = vmatprep.mubr.bf16.mxu0 %v76_v58 }
  0x2c   :  { %554 = vmatmul.mubr.bf16.vlgmr.msra.gmra.mrb[0].mxu1 %v73_v40  ;;  %2180 = vmatprep.subr.bf16.mxu0 %v2452_v41 }
  0x2d   :  { %2267 = vmatprep.mubr.msk.bf16.mxu1 %vm2635_vm0, %v2634_v42  ;;  %2266 = vmatpush3.bf16.msra.mxu1 %v2466_v52 }
  0x2e   :  { %2271 = vmatprep.subr.bf16.mxu1 %v2634_v42 }
  0x2f   :  { %2181 = vmatpush3.bf16.msra.mxu0 %v2453_v44 }
  0x30   :  { %2182 = vmatprep.subr.bf16.mxu0 %v2454_v45 }
  0x33   :  { %2183 = vmatpush3.bf16.msra.mxu0 %v2455_v46 }
  0x34   :  { %2184 = vmatprep.subr.bf16.mxu0 %v2456_v47  ;;  %2268 = vmatmul.mubr.msk.bf16.vlgmr.msra.gmra.mrb[4].mxu1 %vm477_vm1, %v77_v56 }
  0x35   :  { %2287 = vmatprep.mubr.msk.bf16.mxu1 %vm2635_vm0, %v2634_v42 }
  0x37   :  { %2185 = vmatpush3.bf16.msra.mxu0 %v2457_v48 }
  0x38   :  { %2186 = vmatprep.subr.bf16.mxu0 %v2458_v49 }
  0x3b   :  { %2187 = vmatpush3.bf16.msra.mxu0 %v2459_v50 }
  0x3c   :  { %2188 = vmatprep.subr.bf16.mxu0 %v2460_v51 }
  0x3f   :  { %2189 = vmatpush3.bf16.msra.mxu0 %v2461_v57 }
  0x40   :  { %2190 = vmatprep.subr.bf16.mxu0 %v2462_v59 }
  0x43   :  { %2191 = vmatpush3.bf16.msra.mxu0 %v2463_v60 }
  0x44   :  { %2192 = vmatprep.subr.bf16.mxu0 %v2464_v61 }
  0x47   :  { %2193 = vmatpush3.bf16.msra.mxu0 %v2465_v62 }
  0x48   :  { %2291 = vmatprep.subr.bf16.mxu0 %v2634_v42 }
  0x4a   :  { %594 = vmatmul.mubr.bf16.vlgmr.msra.gmra.mrb[4].mxu0 %v75_v63 }
  0x4b   :  { %2307 = vmatprep.mubr.msk.bf16.mxu0 %vm2635_vm0, %v2634_v42 }
  0x4c   :  { %22 = vsyncpa [#allocation3], 0  ;;  %v2468_v0 = vld [vmem:[%s3311_s2] sm:$0xff]   ;;  %v2469_v1 = vld [vmem:[%s3311_s2 + $0x8] sm:$0xff]   ;;  %vm1950_vm2 = vcmask 1041408   ;;  %vm1951_vm3 = vcmask 1043458  }
  0x4d   :  { %2272 = vmatpush3.bf16.msra.mxu1 %v2468_v0  ;;  %v2470_v2 = vld [vmem:[%s3311_s2 + $0x10] sm:$0xff]   ;;  %v2471_v3 = vld [vmem:[%s3311_s2 + $0x18] sm:$0xff]   ;;  %v2472_v4 = vld [vmem:[%s3311_s2 + $0x20] sm:$0xff]   ;;  %vm1953_vm5 = vcmask 128004  }
  0x4e   :  { %2273 = vmatprep.subr.bf16.mxu1 %v2634_v42  ;;  %v2473_v5 = vld [vmem:[%s3311_s2 + $0x28] sm:$0xff]   ;;  %v2474_v6 = vld [vmem:[%s3311_s2 + $0x30] sm:$0xff]   ;;  %v2475_v7 = vld [vmem:[%s3311_s2 + $0x38] sm:$0xff]  }
  0x4f   :  { %v2476_v8 = vld [vmem:[%s3312_s3] sm:$0xff]   ;;  %v2477_v9 = vld [vmem:[%s3312_s3 + $0x8] sm:$0xff]   ;;  %v2478_v10 = vld [vmem:[%s3312_s3 + $0x10] sm:$0xff]  }
  0x50   :  { %2292 = vmatpush3.bf16.msra.mxu0 %v2476_v8  ;;  %v2479_v11 = vld [vmem:[%s3312_s3 + $0x18] sm:$0xff]   ;;  %v2480_v12 = vld [vmem:[%s3312_s3 + $0x20] sm:$0xff]   ;;  %v2481_v13 = vld [vmem:[%s3312_s3 + $0x28] sm:$0xff]  }
  0x51   :  { %2274 = vmatpush3.bf16.msra.mxu1 %v2469_v1  ;;  %2293 = vmatprep.subr.bf16.mxu0 %v2634_v42  ;;  %v1970_v15 = vld [vmem:[%s3318_s9] ss:$0 sm:$0xff]  ;;  %v2482_v40 = vld [vmem:[%s3312_s3 + $0x30] sm:$0xff]   ;;  %v2483_v41 = vld [vmem:[%s3312_s3 + $0x38] sm:$0xff]  }
  0x52   :  { %2275 = vmatprep.subr.bf16.mxu1 %v2634_v42  ;;  %v2484_v43 = vld [vmem:[%s3313_s4] sm:$0xff]   ;;  %v2485_v44 = vld [vmem:[%s3313_s4 + $0x8] sm:$0xff]   ;;  %v2486_v45 = vld [vmem:[%s3313_s4 + $0x10] sm:$0xff]  }
  0x53   :  { %v2487_v46 = vld [vmem:[%s3313_s4 + $0x18] sm:$0xff]   ;;  %v2488_v47 = vld [vmem:[%s3313_s4 + $0x20] sm:$0xff]   ;;  %v2489_v48 = vld [vmem:[%s3313_s4 + $0x28] sm:$0xff]  }
  0x54   :  { %2294 = vmatpush3.bf16.msra.mxu0 %v2477_v9  ;;  %v2021_v49 = vld [vmem:[%s3319_s10] ss:$0 sm:$0xff]  ;;  %v2490_v57 = vld [vmem:[%s3313_s4 + $0x30] sm:$0xff]   ;;  %v2491_v58 = vld [vmem:[%s3313_s4 + $0x38] sm:$0xff]  }
  0x55   :  { %2276 = vmatpush3.bf16.msra.mxu1 %v2470_v2  ;;  %2295 = vmatprep.subr.bf16.mxu0 %v2634_v42  ;;  %v2492_v59 = vld [vmem:[%s3314_s5] sm:$0xff]   ;;  %v2493_v60 = vld [vmem:[%s3314_s5 + $0x8] sm:$0xff]   ;;  %v2494_v61 = vld [vmem:[%s3314_s5 + $0x10] sm:$0xff]  }
  0x56   :  { %2277 = vmatprep.subr.bf16.mxu1 %v2634_v42  ;;  %v2495_v62 = vld [vmem:[%s3314_s5 + $0x18] sm:$0xff]   ;;  %v2496_v63 = vld [vmem:[%s3314_s5 + $0x20] sm:$0xff]   ;;  %v2497_v0 = vld [vmem:[%s3314_s5 + $0x28] sm:$0xff]  }
  0x57   :  { %v2498_v1 = vld [vmem:[%s3314_s5 + $0x30] sm:$0xff]   ;;  %v2030_v2 = vld [vmem:[%s3320_s11] ss:$0 sm:$0xff]  ;;  %vm1952_vm4 = vmor %vm1951_vm3, %vm1950_vm2 }
  0x58   :  { %2296 = vmatpush3.bf16.msra.mxu0 %v2478_v10  ;;  %v2499_v10 = vld [vmem:[%s3314_s5 + $0x38] sm:$0xff]   ;;  %vm1954_vm6 = vmor %vm1953_vm5, %vm1952_vm4 }
  0x59   :  { %2278 = vmatpush3.bf16.msra.mxu1 %v2471_v3  ;;  %2297 = vmatprep.subr.bf16.mxu0 %v2634_v42 }
  0x5a   :  { %2279 = vmatprep.subr.bf16.mxu1 %v2634_v42 }
  0x5c   :  { %2298 = vmatpush3.bf16.msra.mxu0 %v2479_v11  ;;  %v2500_v11 = vld [vmem:[%s3315_s6] sm:$0xff]  }
  0x5d   :  { %2280 = vmatpush3.bf16.msra.mxu1 %v2472_v4  ;;  %2299 = vmatprep.subr.bf16.mxu0 %v2634_v42 }
  0x5e   :  { %2281 = vmatprep.subr.bf16.mxu1 %v2634_v42 }
  0x60   :  { %2300 = vmatpush3.bf16.msra.mxu0 %v2480_v12  ;;  %v2501_v12 = vld [vmem:[%s3315_s6 + $0x8] sm:$0xff]  }
  0x61   :  { %2282 = vmatpush3.bf16.msra.mxu1 %v2473_v5  ;;  %2301 = vmatprep.subr.bf16.mxu0 %v2634_v42 }
  0x62   :  { %2283 = vmatprep.subr.bf16.mxu1 %v2634_v42 }
  0x64   :  { %2302 = vmatpush3.bf16.msra.mxu0 %v2481_v13  ;;  %v2502_v13 = vld [vmem:[%s3315_s6 + $0x10] sm:$0xff]  }
  0x65   :  { %2284 = vmatpush3.bf16.msra.mxu1 %v2474_v6  ;;  %2303 = vmatprep.subr.bf16.mxu0 %v2634_v42 }
  0x66   :  { %2285 = vmatprep.subr.bf16.mxu1 %v2634_v42 }
  0x68   :  { %2304 = vmatpush3.bf16.msra.mxu0 %v2482_v40  ;;  %v2514_v40 = vld [vmem:[%s3316_s7 + $0x30] sm:$0xff]  }
  0x69   :  { %2286 = vmatpush3.bf16.msra.mxu1 %v2475_v7  ;;  %2305 = vmatprep.subr.bf16.mxu0 %v2634_v42 }
  0x6a   :  { %2311 = vmatprep.subr.bf16.mxu1 %v2634_v42 }
  0x6c   :  { %2306 = vmatpush3.bf16.msra.mxu0 %v2483_v41  ;;  %v2515_v41 = vld [vmem:[%s3316_s7 + $0x38] sm:$0xff]  }
  0x6d   :  { %2331 = vmatprep.subr.bf16.mxu0 %v2634_v42 }
  0xfd   :  { %v2150_v14 = vpop.f32.mrb[0].mxu0 }
  0xfe   :  { %v2151_v16 = vpop.f32.mrb[1].mxu0 }
  0xff   :  { %v2152_v17 = vadd.f32 %v2151_v16, %v2150_v14  ;;  %v2153_v18 = vpop.f32.mrb[2].mxu0  ;;  %v2172_v19 = vpop.f32.mrb[0].mxu1  ;;  %v2503_v14 = vld [vmem:[%s3315_s6 + $0x18] sm:$0xff]   ;;  %v2505_v16 = vld [vmem:[%s3315_s6 + $0x28] sm:$0xff]  }
 0x100   :  { %v2154_v20 = vpop.f32.mrb[3].mxu0  ;;  %v2173_v21 = vpop.f32.mrb[1].mxu1 }
 0x101   :  { %v516_v22 = vadd.f32 %v2152_v17, %v1970_v15  ;;  %v2174_v23 = vadd.f32 %v2173_v21, %v2172_v19  ;;  %v2175_v24 = vpop.f32.mrb[2].mxu1  ;;  %v2504_v15 = vld [vmem:[%s3315_s6 + $0x20] sm:$0xff]  }
 0x102   :  { %v2176_v25 = vpop.f32.mrb[3].mxu1  ;;  %v2039_v17 = vld [vmem:[%s3321_s12] ss:$0 sm:$0xff]  ;;  %v2506_v24 = vld [vmem:[%s3315_s6 + $0x30] sm:$0xff]  }
 0x103   :  { %v556_v26 = vadd.f32 %v2174_v23, %v516_v22  ;;  %v2507_v25 = vld [vmem:[%s3315_s6 + $0x38] sm:$0xff]  }
 0x107   :  { %v635_v27 = vpop.f32.mrb[4].mxu1 }
 0x108   :  { %v2269_v28 = vpop.f32.mrb[5].mxu1 }
 0x109   :  { %v638_v29 = vpop.f32.mrb[6].mxu1  ;;  %v2510_v28 = vld [vmem:[%s3316_s7 + $0x10] sm:$0xff]  }
 0x10a   :  { %v2270_v30 = vpop.f32.mrb[7].mxu1  ;;  %v2511_v29 = vld [vmem:[%s3316_s7 + $0x18] sm:$0xff]  }
 0x10b   :  { %v2512_v30 = vld [vmem:[%s3316_s7 + $0x20] sm:$0xff]  }
 0x11d   :  { %v2194_v31 = vpop.f32.mrb[4].mxu0 }
 0x11e   :  { %v2195_v32 = vpop.f32.mrb[5].mxu0 }
 0x11f   :  { %v2196_v33 = vadd.f32 %v2195_v32, %v2194_v31  ;;  %v2197_v34 = vpop.f32.mrb[6].mxu0  ;;  %v2513_v31 = vld [vmem:[%s3316_s7 + $0x28] sm:$0xff]   ;;  %v2048_v32 = vld [vmem:[%s3322_s13] ss:$0 sm:$0xff] }
 0x120   :  { %v2198_v35 = vpop.f32.mrb[7].mxu0 }
 0x121   :  { %v596_v36 = vadd.f32 %v2196_v33, %v556_v26  ;;  %v2508_v26 = vld [vmem:[%s3316_s7] sm:$0xff]  }
 0x123   :  { %v636_v37 = vadd.f32 %v635_v27, %v596_v36  ;;  %v2509_v27 = vld [vmem:[%s3316_s7 + $0x8] sm:$0xff]  }
 0x125   :  { %v641_v38 = vmax.f32 %v636_v37, 0.0 }
 0x127   :  { %v642_v39 = vpack.c.bf16 %v641_v38, %v641_v38 }
 0x129   :  { %2288 = vmatmul.mubr.bf16.vlgmr.msra.gmra.mrb[8].mxu1 %v642_v39 }
 0x12a   :  { %2327 = vmatprep.mubr.msk.bf16.mxu1 %vm2635_vm0, %v2634_v42  ;;  %2312 = vmatpush3.bf16.msra.mxu1 %v2484_v43  ;;  %v2516_v43 = vld [vmem:[%s3317_s8] ss:$28 sps:$4 sm:$0xff]  }
 0x12b   :  { %2313 = vmatprep.subr.bf16.mxu1 %v2634_v42 }
 0x12e   :  { %2314 = vmatpush3.bf16.msra.mxu1 %v2485_v44  ;;  %v2518_v44 = vld [vmem:[%s3317_s8 + $0x4] ss:$28 sps:$4 sm:$0xff]  }
 0x12f   :  { %2315 = vmatprep.subr.bf16.mxu1 %v2634_v42 }
 0x132   :  { %2316 = vmatpush3.bf16.msra.mxu1 %v2486_v45  ;;  %v2521_v45 = vld [vmem:[%s3317_s8 + $0xc] ss:$28 sps:$4 sm:$0xff]  }
 0x133   :  { %2317 = vmatprep.subr.bf16.mxu1 %v2634_v42 }
 0x136   :  { %2318 = vmatpush3.bf16.msra.mxu1 %v2487_v46  ;;  %v2524_v46 = vld [vmem:[%s3317_s8 + $0x3c] ss:$28 sps:$4 sm:$0xff]  }
 0x137   :  { %2319 = vmatprep.subr.bf16.mxu1 %v2634_v42 }
 0x13a   :  { %2320 = vmatpush3.bf16.msra.mxu1 %v2488_v47  ;;  %v2522_v47 = vld [vmem:[%s3317_s8 + $0x38] ss:$28 sps:$4 sm:$0xff]  }
 0x13b   :  { %2321 = vmatprep.subr.bf16.mxu1 %v2634_v42 }
 0x13e   :  { %2322 = vmatpush3.bf16.msra.mxu1 %v2489_v48  ;;  %v2530_v48 = vld [vmem:[%s3317_s8 + $0x74] ss:$28 sps:$4 sm:$0xff]  }
 0x13f   :  { %2323 = vmatprep.subr.bf16.mxu1 %v2634_v42 }
 0x142   :  { %2324 = vmatpush3.bf16.msra.mxu1 %v2490_v57  ;;  %v2552_v57 = vld [vmem:[%s3317_s8 + $0x150] ss:$28 sps:$4 sm:$0xff]  }
 0x143   :  { %2325 = vmatprep.subr.bf16.mxu1 %v2634_v42 }
 0x146   :  { %2326 = vmatpush3.bf16.msra.mxu1 %v2491_v58  ;;  %v2057_v58 = vld [vmem:[%s3323_s14] ss:$0 sm:$0xff] }
 0x147   :  { %2351 = vmatprep.subr.bf16.mxu1 %v2634_v42 }
 0x1fc   :  { %v748_v50 = vpop.f32.mrb[8].mxu1 }
 0x1fd   :  { %v749_v51 = vadd.f32 %v2021_v49, %v748_v50  ;;  %v2289_v52 = vpop.f32.mrb[9].mxu1  ;;  %v2528_v49 = vld [vmem:[%s3317_s8 + $0x70] ss:$28 sps:$4 sm:$0xff]  }
 0x1fe   :  { %v751_v53 = vpop.f32.mrb[10].mxu1  ;;  %v2536_v50 = vld [vmem:[%s3317_s8 + $0xac] ss:$28 sps:$4 sm:$0xff]   ;;  %v2542_v52 = vld [vmem:[%s3317_s8 + $0xe4] ss:$28 sps:$4 sm:$0xff]  }
 0x1ff   :  { %v754_v54 = vmax.f32 %v749_v51, 0.0  ;;  %v2290_v55 = vpop.f32.mrb[11].mxu1  ;;  %v2534_v51 = vld [vmem:[%s3317_s8 + $0xa8] ss:$28 sps:$4 sm:$0xff]   ;;  %v2540_v53 = vld [vmem:[%s3317_s8 + $0xe0] ss:$28 sps:$4 sm:$0xff]  }
 0x200   :  { %v2546_v55 = vld [vmem:[%s3317_s8 + $0x118] ss:$28 sps:$4 sm:$0xff]  }
 0x201   :  { %v755_v56 = vpack.c.bf16 %v754_v54, %v754_v54  ;;  %v2548_v54 = vld [vmem:[%s3317_s8 + $0x11c] ss:$28 sps:$4 sm:$0xff]  }
 0x203   :  { %2308 = vmatmul.mubr.bf16.vlgmr.msra.gmra.mrb[8].mxu0 %v755_v56  ;;  %v2554_v56 = vld [vmem:[%s3317_s8 + $0x154] ss:$28 sps:$4 sm:$0xff]  }
 0x204   :  { %2347 = vmatprep.mubr.msk.bf16.mxu0 %vm2635_vm0, %v2634_v42  ;;  %2332 = vmatpush3.bf16.msra.mxu0 %v2492_v59 }
 0x205   :  { %2333 = vmatprep.subr.bf16.mxu0 %v2634_v42 }
 0x208   :  { %2334 = vmatpush3.bf16.msra.mxu0 %v2493_v60 }
 0x209   :  { %2335 = vmatprep.subr.bf16.mxu0 %v2634_v42 }
 0x20c   :  { %2336 = vmatpush3.bf16.msra.mxu0 %v2494_v61 }
 0x20d   :  { %2337 = vmatprep.subr.bf16.mxu0 %v2634_v42 }
 0x210   :  { %2338 = vmatpush3.bf16.msra.mxu0 %v2495_v62 }
 0x211   :  { %2339 = vmatprep.subr.bf16.mxu0 %v2634_v42 }
 0x214   :  { %2340 = vmatpush3.bf16.msra.mxu0 %v2496_v63 }
 0x215   :  { %2341 = vmatprep.subr.bf16.mxu0 %v2634_v42 }
 0x218   :  { %2342 = vmatpush3.bf16.msra.mxu0 %v2497_v0 }
 0x219   :  { %2343 = vmatprep.subr.bf16.mxu0 %v2634_v42 }
 0x21c   :  { %2344 = vmatpush3.bf16.msra.mxu0 %v2498_v1  ;;  %v2519_v1 = vld [vmem:[%s3317_s8 + $0x8] ss:$28 sps:$4 sm:$0xff]  }
 0x21d   :  { %2345 = vmatprep.subr.bf16.mxu0 %v2634_v42 }
 0x220   :  { %2346 = vmatpush3.bf16.msra.mxu0 %v2499_v10  ;;  %v2543_v10 = vld [vmem:[%s3317_s8 + $0xe8] ss:$28 sps:$4 sm:$0xff]  }
 0x221   :  { %2371 = vmatprep.subr.bf16.mxu0 %v2634_v42 }
 0x2d6   :  { %v861_v3 = vpop.f32.mrb[8].mxu0 }
 0x2d7   :  { %v862_v4 = vadd.f32 %v2030_v2, %v861_v3  ;;  %v2309_v5 = vpop.f32.mrb[9].mxu0  ;;  %v2527_v3 = vld [vmem:[%s3317_s8 + $0x44] ss:$28 sps:$4 sm:$0xff]  }
 0x2d8   :  { %v864_v6 = vpop.f32.mrb[10].mxu0  ;;  %v2533_v5 = vld [vmem:[%s3317_s8 + $0x7c] ss:$28 sps:$4 sm:$0xff]  }
 0x2d9   :  { %v867_v7 = vmax.f32 %v862_v4, 0.0  ;;  %v2310_v8 = vpop.f32.mrb[11].mxu0  ;;  %v2525_v4 = vld [vmem:[%s3317_s8 + $0x40] ss:$28 sps:$4 sm:$0xff]   ;;  %v2531_v6 = vld [vmem:[%s3317_s8 + $0x78] ss:$28 sps:$4 sm:$0xff]  }
 0x2da   :  { %v2537_v8 = vld [vmem:[%s3317_s8 + $0xb0] ss:$28 sps:$4 sm:$0xff]  }
 0x2db   :  { %v868_v9 = vpack.c.bf16 %v867_v7, %v867_v7  ;;  %v2539_v7 = vld [vmem:[%s3317_s8 + $0xb4] ss:$28 sps:$4 sm:$0xff]  }
 0x2dd   :  { %2328 = vmatmul.mubr.bf16.vlgmr.msra.gmra.mrb[12].mxu1 %v868_v9  ;;  %v2545_v9 = vld [vmem:[%s3317_s8 + $0xec] ss:$28 sps:$4 sm:$0xff]  }
 0x2de   :  { %2367 = vmatprep.mubr.msk.bf16.mxu1 %vm2635_vm0, %v2634_v42  ;;  %2352 = vmatpush3.bf16.msra.mxu1 %v2500_v11  ;;  %v2551_v11 = vld [vmem:[%s3317_s8 + $0x124] ss:$28 sps:$4 sm:$0xff]  }
 0x2df   :  { %2353 = vmatprep.subr.bf16.mxu1 %v2634_v42 }
 0x2e2   :  { %2354 = vmatpush3.bf16.msra.mxu1 %v2501_v12  ;;  %v2549_v12 = vld [vmem:[%s3317_s8 + $0x120] ss:$28 sps:$4 sm:$0xff]  }
 0x2e3   :  { %2355 = vmatprep.subr.bf16.mxu1 %v2634_v42 }
 0x2e6   :  { %2356 = vmatpush3.bf16.msra.mxu1 %v2502_v13  ;;  %v2557_v13 = vld [vmem:[%s3317_s8 + $0x15c] ss:$28 sps:$4 sm:$0xff]  }
 0x2e7   :  { %2357 = vmatprep.subr.bf16.mxu1 %v2634_v42 }
 0x2ea   :  { %2358 = vmatpush3.bf16.msra.mxu1 %v2503_v14  ;;  %v2555_v14 = vld [vmem:[%s3317_s8 + $0x158] ss:$28 sps:$4 sm:$0xff]  }
 0x2eb   :  { %2359 = vmatprep.subr.bf16.mxu1 %v2634_v42 }
 0x2ee   :  { %2360 = vmatpush3.bf16.msra.mxu1 %v2504_v15  ;;  %v2560_v15 = vld [vmem:[%s3317_s8 + $0x18c] ss:$28 sps:$4 sm:$0xff]  }
 0x2ef   :  { %2361 = vmatprep.subr.bf16.mxu1 %v2634_v42 }
 0x2f2   :  { %2362 = vmatpush3.bf16.msra.mxu1 %v2505_v16  ;;  %v2563_v16 = vld [vmem:[%s3317_s8 + $0x194] ss:$28 sps:$4 sm:$0xff]  }
 0x2f3   :  { %2363 = vmatprep.subr.bf16.mxu1 %v2634_v42 }
 0x2f6   :  { %2364 = vmatpush3.bf16.msra.mxu1 %v2506_v24 }
 0x2f7   :  { %2365 = vmatprep.subr.bf16.mxu1 %v2634_v42 }
 0x2fa   :  { %2366 = vmatpush3.bf16.msra.mxu1 %v2507_v25 }
 0x2fb   :  { %1709 = vmatprep.subr.bf16.mxu1 %v2518_v44  ;;  %v2586_v44 = vld [vmem:[%s3317_s8 + $0x12c] ss:$28 sps:$4 sm:$0xff]  }
 0x3b0   :  { %v974_v18 = vpop.f32.mrb[12].mxu1 }
 0x3b1   :  { %v975_v19 = vadd.f32 %v2039_v17, %v974_v18  ;;  %v2329_v20 = vpop.f32.mrb[13].mxu1  ;;  %v2558_v17 = vld [vmem:[%s3317_s8 + $0x188] ss:$28 sps:$4 sm:$0xff]   ;;  %v2561_v18 = vld [vmem:[%s3317_s8 + $0x190] ss:$28 sps:$4 sm:$0xff]  }
 0x3b2   :  { %v977_v21 = vpop.f32.mrb[14].mxu1  ;;  %v2636_v20 = vmov 0  }
 0x3b3   :  { %v980_v22 = vpack.c.bf16 %v975_v19, %v975_v19  ;;  %v2330_v23 = vpop.f32.mrb[15].mxu1  ;;  %v2566_v19 = vld [vmem:[%s3317_s8 + $0x14] ss:$28 sps:$4 sm:$0xff]   ;;  %v2066_v21 = vld [vmem:[%s3324_s15] ss:$0 sm:$0xff] }
 0x3b5   :  { %2348 = vmatmul.mubr.bf16.vlgmr.msra.gmra.mrb[12].mxu0 %v980_v22 }
 0x3b6   :  { %2387 = vmatprep.mubr.msk.bf16.mxu0 %vm2635_vm0, %v2634_v42  ;;  %2372 = vmatpush3.bf16.msra.mxu0 %v2508_v26 }
 0x3b7   :  { %2373 = vmatprep.subr.bf16.mxu0 %v2634_v42 }
 0x3ba   :  { %2374 = vmatpush3.bf16.msra.mxu0 %v2509_v27 }
 0x3bb   :  { %2375 = vmatprep.subr.bf16.mxu0 %v2634_v42 }
 0x3be   :  { %2376 = vmatpush3.bf16.msra.mxu0 %v2510_v28  ;;  %v2564_v28 = vld [vmem:[%s3317_s8 + $0x10] ss:$28 sps:$4 sm:$0xff]  }
 0x3bf   :  { %2377 = vmatprep.subr.bf16.mxu0 %v2634_v42 }
 0x3c2   :  { %2378 = vmatpush3.bf16.msra.mxu0 %v2511_v29  ;;  %v2567_v29 = vld [vmem:[%s3317_s8 + $0x18] ss:$28 sps:$4 sm:$0xff]  }
 0x3c3   :  { %2379 = vmatprep.subr.bf16.mxu0 %v2634_v42 }
 0x3c6   :  { %2380 = vmatpush3.bf16.msra.mxu0 %v2512_v30 }
 0x3c7   :  { %2381 = vmatprep.subr.bf16.mxu0 %v2634_v42 }
 0x3ca   :  { %2382 = vmatpush3.bf16.msra.mxu0 %v2513_v31  ;;  %v2570_v31 = vld [vmem:[%s3317_s8 + $0x4c] ss:$28 sps:$4 sm:$0xff]  }
 0x3cb   :  { %2383 = vmatprep.subr.bf16.mxu0 %v2634_v42 }
 0x3ce   :  { %2384 = vmatpush3.bf16.msra.mxu0 %v2514_v40  ;;  %v2582_v40 = vld [vmem:[%s3317_s8 + $0xf4] ss:$28 sps:$4 sm:$0xff]  }
 0x3cf   :  { %2385 = vmatprep.subr.bf16.mxu0 %v2634_v42 }
 0x3d2   :  { %2386 = vmatpush3.bf16.msra.mxu0 %v2515_v41  ;;  %v2580_v41 = vld [vmem:[%s3317_s8 + $0xf0] ss:$28 sps:$4 sm:$0xff]  }
 0x3d3   :  { %1750 = vmatprep.subr.bf16.mxu0 %v2521_v45  ;;  %v2584_v45 = vld [vmem:[%s3317_s8 + $0x128] ss:$28 sps:$4 sm:$0xff]  }
 0x488   :  { %v1086_v33 = vpop.f32.mrb[12].mxu0 }
 0x489   :  { %v1087_v34 = vadd.f32 %v2048_v32, %v1086_v33  ;;  %v2349_v35 = vpop.f32.mrb[13].mxu0  ;;  %v2568_v32 = vld [vmem:[%s3317_s8 + $0x48] ss:$28 sps:$4 sm:$0xff]   ;;  %v2571_v33 = vld [vmem:[%s3317_s8 + $0x50] ss:$28 sps:$4 sm:$0xff]  }
 0x48a   :  { %v1089_v36 = vpop.f32.mrb[14].mxu0  ;;  %v2572_v35 = vld [vmem:[%s3317_s8 + $0x80] ss:$28 sps:$4 sm:$0xff]  }
 0x48b   :  { %v1092_v37 = vmax.f32 %v1087_v34, 0.0  ;;  %v2350_v38 = vpop.f32.mrb[15].mxu0  ;;  %v2574_v34 = vld [vmem:[%s3317_s8 + $0x84] ss:$28 sps:$4 sm:$0xff]  }
 0x48c   :  { %v2575_v36 = vld [vmem:[%s3317_s8 + $0x88] ss:$28 sps:$4 sm:$0xff]   ;;  %v2576_v38 = vld [vmem:[%s3317_s8 + $0xb8] ss:$28 sps:$4 sm:$0xff]  }
 0x48d   :  { %v1093_v39 = vpack.c.bf16 %v1092_v37, %v1092_v37  ;;  %v2578_v37 = vld [vmem:[%s3317_s8 + $0xbc] ss:$28 sps:$4 sm:$0xff]  }
 0x48f   :  { %2368 = vmatmul.mubr.bf16.vlgmr.msra.gmra.mrb[16].mxu1 %v1093_v39  ;;  %v2579_v39 = vld [vmem:[%s3317_s8 + $0xc0] ss:$28 sps:$4 sm:$0xff]  }
 0x490   :  { %1710 = vmatpush1.bf16.msra.mxu1 %v2516_v43  ;;  %1741 = vmatprep.mubr.bf16.mxu1 %v2636_v20  ;;  %v2583_v43 = vld [vmem:[%s3317_s8 + $0xf8] ss:$28 sps:$4 sm:$0xff]  }
 0x491   :  { %1711 = vmatprep.subr.bf16.mxu1 %v2524_v46  ;;  %v2587_v46 = vld [vmem:[%s3317_s8 + $0x130] ss:$28 sps:$4 sm:$0xff]  }
 0x494   :  { %1712 = vmatpush1.bf16.msra.mxu1 %v2522_v47  ;;  %v2590_v47 = vld [vmem:[%s3317_s8 + $0x164] ss:$28 sps:$4 sm:$0xff]  }
 0x495   :  { %1713 = vmatprep.subr.bf16.mxu1 %v2530_v48  ;;  %v2588_v48 = vld [vmem:[%s3317_s8 + $0x160] ss:$28 sps:$4 sm:$0xff]  }
 0x498   :  { %1714 = vmatpush1.bf16.msra.mxu1 %v2528_v49  ;;  %v2591_v49 = vld [vmem:[%s3317_s8 + $0x168] ss:$28 sps:$4 sm:$0xff]  }
 0x499   :  { %1715 = vmatprep.subr.bf16.mxu1 %v2536_v50  ;;  %v2594_v50 = vld [vmem:[%s3317_s8 + $0x19c] ss:$28 sps:$4 sm:$0xff]  }
 0x49c   :  { %1716 = vmatpush1.bf16.msra.mxu1 %v2534_v51  ;;  %v2592_v51 = vld [vmem:[%s3317_s8 + $0x198] ss:$28 sps:$4 sm:$0xff]  }
 0x49d   :  { %1717 = vmatprep.subr.bf16.mxu1 %v2542_v52  ;;  %v2595_v52 = vld [vmem:[%s3317_s8 + $0x1a0] ss:$28 sps:$4 sm:$0xff]   ;;  %s2638_s8 = smov [#allocation2]  }
 0x4a0   :  { %1718 = vmatpush1.bf16.msra.mxu1 %v2540_v53  ;;  %v1386_v53 = vlaneseq }
 0x4a1   :  { %1719 = vmatprep.subr.bf16.mxu1 %v2548_v54 }
 0x4a2   :  { %v1387_v54 = vshrl.u32 %v1386_v53, 7 }
 0x4a4   :  { %1720 = vmatpush1.bf16.msra.mxu1 %v2546_v55  ;;  %v1388_v55 = vsub.s32 0, %v1387_v54 }
 0x4a5   :  { %1721 = vmatprep.subr.bf16.mxu1 %v2554_v56  ;;  %v1396_v56 = vsub.s32 2, %v1387_v54 }
 0x4a8   :  { %1722 = vmatpush1.bf16.msra.mxu1 %v2552_v57  ;;  %v1384_v57 = vld [vmem:[%s3325_s16] sm:$0x7f]  ;;  %s1962_s16 = sshll.u32 %s2638_s8, 4  ;;  %s1963_s16 = int_to_ptr.vmem [resolvable:$true] %s1962_s16 }
 0x4a9   :  { %1723 = vmatprep.subr.bf16.mxu1 %v2560_v15  ;;  %v2637_v15 = vmov 1983009808   ;;  %s2610_s18 = scalar_lea.vmem %s1963_s16, 224  ;;  %p2615_p1 = scmp.lt.s32.totalorder %s1963_s16, %s1963_s16 }
 0x4aa   :  { %p2611_p0 = scmp.ne.s32.totalorder %s1963_s16, %s2610_s18  ;;  %p2616_p2 = scmp.lt.s32.totalorder %s2610_s18, %s2610_s18 }
 0x4ac   :  { %1724 = vmatpush1.bf16.msra.mxu1 %v2558_v17  ;;  %p2617_p3 = por %p2616_p2, %p2615_p1 }
 0x4ad   :  { %1791 = vmatprep.subr.bf16.mxu1 %v2566_v19 }
 0x4ae   :  { %p2618_p4 = pnand %p2617_p3, %p2611_p0 }
 0x562   :  { %v1199_v59 = vpop.f32.mrb[16].mxu1 }
 0x563   :  { %v1200_v60 = vadd.f32 %v2057_v58, %v1199_v59  ;;  %v2369_v61 = vpop.f32.mrb[17].mxu1  ;;  %v1392_v58 = vsub.s32 1, %v1387_v54  ;;  %v1400_v59 = vsub.s32 3, %v1387_v54 }
 0x564   :  { %v1202_v62 = vpop.f32.mrb[18].mxu1  ;;  %v1397_v61 = vrot.slane %v1384_v57, %v1396_v56 }
 0x565   :  { %v1205_v63 = vmax.f32 %v1200_v60, 0.0  ;;  %v2370_v0 = vpop.f32.mrb[19].mxu1  ;;  %v1389_v60 = vrot.slane %v1384_v57, %v1388_v55  ;;  %v1393_v62 = vrot.slane %v1384_v57, %v1392_v58 }
 0x567   :  { %v1206_v2 = vpack.c.bf16 %v1205_v63, %v1205_v63  ;;  %v1401_v63 = vrot.slane %v1384_v57, %v1400_v59 }
 0x569   :  { %2388 = vmatmul.mubr.bf16.vlgmr.msra.gmra.mrb[16].mxu0 %v1206_v2 }
 0x56a   :  { %1751 = vmatpush1.bf16.msra.mxu0 %v2519_v1  ;;  %1782 = vmatprep.mubr.bf16.mxu0 %v2636_v20 }
 0x56b   :  { %1752 = vmatprep.subr.bf16.mxu0 %v2527_v3 }
 0x56e   :  { %1753 = vmatpush1.bf16.msra.mxu0 %v2525_v4 }
 0x56f   :  { %1754 = vmatprep.subr.bf16.mxu0 %v2533_v5 }
 0x572   :  { %1755 = vmatpush1.bf16.msra.mxu0 %v2531_v6 }
 0x573   :  { %1756 = vmatprep.subr.bf16.mxu0 %v2539_v7 }
 0x576   :  { %1757 = vmatpush1.bf16.msra.mxu0 %v2537_v8 }
 0x577   :  { %1758 = vmatprep.subr.bf16.mxu0 %v2545_v9 }
 0x57a   :  { %1759 = vmatpush1.bf16.msra.mxu0 %v2543_v10 }
 0x57b   :  { %1760 = vmatprep.subr.bf16.mxu0 %v2551_v11 }
 0x57e   :  { %1761 = vmatpush1.bf16.msra.mxu0 %v2549_v12 }
 0x57f   :  { %1762 = vmatprep.subr.bf16.mxu0 %v2557_v13 }
 0x582   :  { %1763 = vmatpush1.bf16.msra.mxu0 %v2555_v14 }
 0x583   :  { %1764 = vmatprep.subr.bf16.mxu0 %v2563_v16  ;;  %v1917_v16 = vunpack.c.l.s4 %v2637_v15 }
 0x586   :  { %1765 = vmatpush1.bf16.msra.mxu0 %v2561_v18 }
 0x587   :  { %2391 = vmatprep.subr.bf16.mxu0 %v2634_v42 }
 0x63c   :  { %v1312_v22 = vpop.f32.mrb[16].mxu0 }
 0x63d   :  { %v1313_v23 = vadd.f32 %v2066_v21, %v1312_v22  ;;  %v2389_v24 = vpop.f32.mrb[17].mxu0 }
 0x63e   :  { %v1315_v25 = vpop.f32.mrb[18].mxu0 }
 0x63f   :  { %v1318_v26 = vmax.f32 %v1313_v23, 0.0  ;;  %v2390_v27 = vpop.f32.mrb[19].mxu0 }
 0x641   :  { %v1319_v30 = vpack.c.bf16 %v1318_v26, %v1318_v26 }
 0x643   :  { %1742 = vmatmul.mubr.bf16.vlgmr.msra.gmra.mrb[20].mxu1 %v1319_v30  ;;  %1783 = vmatmul.mubr.bf16.vlgmr.msra.gmra.mrb[20].mxu0 %v1319_v30 }
 0x644   :  { %1792 = vmatpush1.bf16.msra.mxu1 %v2564_v28  ;;  %2392 = vmatpush3.bf16.msra.mxu0 %v2567_v29 }
 0x645   :  { %1793 = vmatprep.subr.bf16.mxu1 %v2570_v31  ;;  %2393 = vmatprep.subr.bf16.mxu0 %v2634_v42 }
 0x646   :  { %1823 = vmatprep.mubr.bf16.mxu1 %v2636_v20  ;;  %2407 = vmatprep.mubr.msk.bf16.mxu0 %vm2635_vm0, %v2634_v42  ;;  %v1918_v20 = vunpack.c.0.s8 %v1917_v16 }
 0x648   :  { %1794 = vmatpush1.bf16.msra.mxu1 %v2568_v32  ;;  %2394 = vmatpush3.bf16.msra.mxu0 %v2571_v33  ;;  %v1921_v29 = vsub.s32 %v1918_v20, %v1387_v54 }
 0x649   :  { %1795 = vmatprep.subr.bf16.mxu1 %v2574_v34  ;;  %2395 = vmatprep.subr.bf16.mxu0 %v2634_v42  ;;  %v1404_v34 = vsub.s32 4, %v1387_v54 }
 0x64c   :  { %1796 = vmatpush1.bf16.msra.mxu1 %v2572_v35  ;;  %2396 = vmatpush3.bf16.msra.mxu0 %v2575_v36  ;;  %v1412_v35 = vsub.s32 6, %v1387_v54 }
 0x64d   :  { %1797 = vmatprep.subr.bf16.mxu1 %v2578_v37  ;;  %2397 = vmatprep.subr.bf16.mxu0 %v2634_v42  ;;  %v1408_v37 = vsub.s32 5, %v1387_v54 }
 0x650   :  { %1798 = vmatpush1.bf16.msra.mxu1 %v2576_v38  ;;  %2398 = vmatpush3.bf16.msra.mxu0 %v2579_v39  ;;  %v1405_v39 = vrot.slane %v1384_v57, %v1404_v34 }
 0x651   :  { %1799 = vmatprep.subr.bf16.mxu1 %v2582_v40  ;;  %2399 = vmatprep.subr.bf16.mxu0 %v2634_v42  ;;  %v1413_v40 = vrot.slane %v1384_v57, %v1412_v35 }
 0x654   :  { %1800 = vmatpush1.bf16.msra.mxu1 %v2580_v41  ;;  %2400 = vmatpush3.bf16.msra.mxu0 %v2583_v43  ;;  %v1409_v41 = vrot.slane %v1384_v57, %v1408_v37 }
 0x655   :  { %1801 = vmatprep.subr.bf16.mxu1 %v2586_v44  ;;  %2401 = vmatprep.subr.bf16.mxu0 %v2634_v42 }
 0x658   :  { %1802 = vmatpush1.bf16.msra.mxu1 %v2584_v45  ;;  %2402 = vmatpush3.bf16.msra.mxu0 %v2587_v46 }
 0x659   :  { %1803 = vmatprep.subr.bf16.mxu1 %v2590_v47  ;;  %2403 = vmatprep.subr.bf16.mxu0 %v2634_v42 }
 0x65c   :  { %1804 = vmatpush1.bf16.msra.mxu1 %v2588_v48  ;;  %2404 = vmatpush3.bf16.msra.mxu0 %v2591_v49 }
 0x65d   :  { %1805 = vmatprep.subr.bf16.mxu1 %v2594_v50  ;;  %2405 = vmatprep.subr.bf16.mxu0 %v2634_v42 }
 0x660   :  { %1806 = vmatpush1.bf16.msra.mxu1 %v2592_v51  ;;  %2406 = vmatpush3.bf16.msra.mxu0 %v2595_v52 }
 0x663   :  { %1824 = vmatmul.mubr.bf16.vlgmr.msra.gmra.mrb[24].mxu1 %v1319_v30  ;;  %2408 = vmatmul.mubr.bf16.vlgmr.msra.gmra.mrb[24].mxu0 %v1319_v30 }
 0x716   :  { %v1743_v0 = vpop.f32.mrb[20].mxu1  ;;  %v1784_v42 = vpop.f32.mrb[20].mxu0 }
 0x717   :  { %v1744_v1 = vadd.f32 %v1743_v0, %v1389_v60  ;;  %v1785_v2 = vadd.f32 %v1784_v42, %v1397_v61  ;;  %v1745_v3 = vpop.f32.mrb[21].mxu1  ;;  %v1786_v4 = vpop.f32.mrb[21].mxu0 }
 0x718   :  { %v1746_v5 = vadd.f32 %v1745_v3, %v1393_v62  ;;  %v1787_v6 = vadd.f32 %v1786_v4, %v1401_v63  ;;  %v1747_v7 = vpop.f32.mrb[22].mxu1  ;;  %v1788_v8 = vpop.f32.mrb[22].mxu0 }
 0x719   :  { %v1872_v9 = vmul.f32 0.5, %v1744_v1  ;;  %v1874_v10 = vmul.f32 0.5, %v1785_v2  ;;  %v1748_v11 = vpop.f32.mrb[23].mxu1  ;;  %v1789_v12 = vpop.f32.mrb[23].mxu0 }
 0x71a   :  { %v1873_v13 = vmul.f32 0.5, %v1746_v5  ;;  %v1875_v14 = vmul.f32 0.5, %v1787_v6 }
 0x71b   :  { %2596 = vtanh.f32 %v1872_v9 }
 0x71c   :  { %2598 = vtanh.f32 %v1874_v10 }
 0x71d   :  { %2600 = vtanh.f32 %v1873_v13 }
 0x71e   :  { %2602 = vtanh.f32 %v1875_v14 }
 0x725   :  { %v2597_v17 = vpop.eup %2596 }
 0x726   :  { %v2599_v18 = vpop.eup %2598  ;;  %v1886_v19 = vadd.f32 1.0, %v2597_v17 }
 0x727   :  { %v2601_v21 = vpop.eup %2600  ;;  %v1888_v22 = vadd.f32 1.0, %v2599_v18 }
 0x728   :  { %v2603_v23 = vpop.eup %2602  ;;  %v1893_v24 = vmul.f32 0.5, %v1886_v19  ;;  %v1887_v25 = vadd.f32 1.0, %v2601_v21 }
 0x729   :  { %v1895_v26 = vmul.f32 0.5, %v1888_v22  ;;  %v1889_v27 = vadd.f32 1.0, %v2603_v23 }
 0x72a   :  { %v1894_v28 = vmul.f32 0.5, %v1887_v25 }
 0x72b   :  { %v1896_v30 = vmul.f32 0.5, %v1889_v27 }
 0x72c   :  { %v2131_v31 = vpack.c.bf16 %v1894_v28, %v1893_v24 }
 0x72d   :  { %v2132_v32 = vpack.c.bf16 %v1896_v30, %v1895_v26 }
 0x72e   :  { %v1922_v33 = vrot.slane %v2131_v31, %v1921_v29 }
 0x72f   :  { %v1929_v36 = vrot.slane %v2132_v32, %v1921_v29 }
 0x731   :  { %v1930_v38 = vcombine.low %v1922_v33, %v1929_v36 }
 0x733   :  { %1949 = vst [vmem:[#allocation2] sm:$0xff] %v1930_v38 }
 0x736   :  { %v1825_v43 = vpop.f32.mrb[24].mxu1  ;;  %v1866_v44 = vpop.f32.mrb[24].mxu0 }
 0x737   :  { %v1826_v45 = vadd.f32 %v1825_v43, %v1405_v39  ;;  %v1867_v46 = vadd.f32 %v1866_v44, %v1413_v40  ;;  %v1827_v47 = vpop.f32.mrb[25].mxu1  ;;  %v2409_v48 = vpop.f32.mrb[25].mxu0 }
 0x738   :  { %v1828_v49 = vadd.f32 %v1827_v47, %v1409_v41  ;;  %v1829_v50 = vpop.f32.mrb[26].mxu1  ;;  %v1869_v51 = vpop.f32.mrb[26].mxu0 }
 0x739   :  { %v1876_v52 = vmul.f32 0.5, %v1826_v45  ;;  %v1878_v53 = vmul.f32 0.5, %v1867_v46  ;;  %v1830_v55 = vpop.f32.mrb[27].mxu1  ;;  %v2410_v56 = vpop.f32.mrb[27].mxu0 }
 0x73a   :  { %v1877_v58 = vmul.f32 0.5, %v1828_v49 }
 0x73b   :  { %2604 = vtanh.f32 %v1876_v52 }
 0x73c   :  { %2606 = vtanh.f32 %v1878_v53 }
 0x73d   :  { %2608 = vtanh.f32 %v1877_v58 }
 0x745   :  { %v2605_v54 = vpop.eup %2604 }
 0x746   :  { %v2607_v59 = vpop.eup %2606  ;;  %v1890_v57 = vadd.f32 1.0, %v2605_v54 }
 0x747   :  { %v2609_v60 = vpop.eup %2608  ;;  %v1892_v61 = vadd.f32 1.0, %v2607_v59 }
 0x748   :  { %v1897_v62 = vmul.f32 0.5, %v1890_v57  ;;  %v1891_v63 = vadd.f32 1.0, %v2609_v60 }
 0x749   :  { %v1899_v0 = vmul.f32 0.5, %v1892_v61 }
 0x74a   :  { %v1898_v42 = vmul.f32 0.5, %v1891_v63 }
 0x74b   :  { %v1906_v1 = vpack.c.bf16 %v1899_v0, %v1899_v0 }
 0x74c   :  { %v2133_v2 = vpack.c.bf16 %v1898_v42, %v1897_v62 }
 0x74d   :  { %v1945_v3 = vrot.slane %v1906_v1, %v1921_v29 }
 0x74e   :  { %v1938_v4 = vrot.slane %v2133_v2, %v1921_v29 }
 0x750   :  { %v1946_v5 = vcombine.low %v1938_v4, %v1945_v3 }
 0x752   :  { %1955 = vst.msk [vmem:[#allocation2 + $0x8] sm:$0x3f] %vm1954_vm6, %v1946_v5 }
 0x753   :  { %2621 = shalt.err (!%p2618_p4)
}
 0x754   :  { %s2622_s14 = scalar_lea.hbm %s3326_s17, 224 }
 0x755   :  { %p2623_p5 = scmp.ne.s32.totalorder %s3326_s17, %s2622_s14  ;;  %p2626_p6 = scmp.lt.u32.totalorder %s2622_s14, %s3326_s17 }
 0x757   :  { %p2628_p7 = pnand %p2626_p6, %p2623_p5 }
 0x759   :  { %2631 = shalt.err (!%p2628_p7)
}
 0x75a   :  { %1965 = dma.vmem_to_hbm [thread:$0]  %s1963_s16, 224, %s3326_s17, [#allocation3]  }
 0x75b   :  { %2632 = dma.done.wait [#allocation3], 224  }
 0x75c   :  { %2633 = vsyncadd [#allocation3], 4294967072 }
 0x75d   :  { %1969 = vsyncpa [#allocation3], 1 }

</bundles_post_ra>
